<compile_context>
chip_gen: v5e
topology: v5e:2x2
jax: 0.10.0
libtpu: 0.0.40
codegen_flags: <defaults>
</compile_context>

<pallas_src>
import functools
import math

import jax
import jax.numpy as jnp
from jax.experimental import pallas as pl
from jax.experimental.pallas import tpu as pltpu


def _round_up(x: int, m: int) -> int:
    return ((x + m - 1) // m) * m


def _select_mxu_dtype(in_dtype):
    """bf16 MXU operands when the input is bf16 or the device is v5e (f32 MXU is emulated there)."""
    if jnp.dtype(in_dtype) == jnp.dtype(jnp.bfloat16):
        return jnp.bfloat16
    try:
        kind = jax.devices()[0].device_kind.lower()
    except Exception:
        kind = ""
    if "v5 lite" in kind or "v5lite" in kind or "v5e" in kind:
        return jnp.bfloat16
    return jnp.float32


def _choose_pack_factor(T: int, D: int, rhs_itemsize: int,
                        rhs_budget_bytes: int = 4 * 1024 * 1024) -> int:
    """Docs packed per row: always make k*D a multiple of 128 (lane-dense output), and when the
    resident block-diagonal RHS stays small also make k*T a multiple of 128 (lane-dense LHS)."""
    if D >= 128:
        return 1
    k_out = 128 // math.gcd(D, 128)                       # smallest k with k*D % 128 == 0
    k_in = 128 // math.gcd(T, 128)                        # smallest k with k*T % 128 == 0
    k_full = k_out * k_in // math.gcd(k_out, k_in)        # both lane-dense

    def rhs_bytes(k):
        return 2 * (k * T) * (k * D) * rhs_itemsize       # fused [tv | ones] block-diag RHS

    for k in (k_full, k_out, max(1, 128 // D)):
        if rhs_bytes(k) <= rhs_budget_bytes:
            return k
    return 1


def _topic_embedding_kernel(w_ref, rhs_ref, o_ref, *, kd):
    # w_ref:   (rb, k*T)      k docs' topic logits packed per row (lane-dense)
    # rhs_ref: (k*T, 2*k*D)   [ block_diag(topic_vectors) | block_diag(ones(T, D)) ], resident
    # o_ref:   (rb, k*D)      k doc vectors packed per row
    w = w_ref[...].astype(jnp.float32)
    # Numerically-stable softmax: subtract the packed-row max (softmax is shift-invariant per doc,
    # and the row max is >= every per-doc max). f32 math regardless of the MXU operand dtype.
    m = jnp.max(w, axis=-1, keepdims=True)
    e = jnp.exp(w - m)
    # Single fused MXU matmul: left k*D lanes -> unnormalized doc vectors, right k*D lanes ->
    # per-doc sum of exps broadcast across D lanes. Both slices sit on 128-lane boundaries.
    r = jnp.dot(e.astype(rhs_ref.dtype), rhs_ref[...], preferred_element_type=jnp.float32)
    num = r[:, :kd]
    den = r[:, kd:]
    # Guard against shared-row-max underflow (den -> 0 for a doc whose logits sit far below its
    # rowmates): emit 0 instead of inf/NaN. Exact whenever no underflow occurs.
    den = jnp.maximum(den, jnp.float32(1e-30))
    o_ref[...] = (num * pl.reciprocal(den, approx=True)).astype(o_ref.dtype)


def topic_embedding_forward(doc_weights, topic_vectors, *, block_rows=None,
                            mxu_dtype=None, out_dtype=None):
    """doc_weights: (B, T), topic_vectors: (T, D) -> (B, D) = softmax(doc_weights, 1) @ topic_vectors."""
    B, T = doc_weights.shape
    T2, D = topic_vectors.shape
    assert T == T2
    in_dtype = doc_weights.dtype
    out_dtype = in_dtype if out_dtype is None else out_dtype  # bf16 halves output HBM traffic
    itemsize = jnp.dtype(in_dtype).itemsize

    if mxu_dtype is None:
        mxu_dtype = _select_mxu_dtype(in_dtype)
    rhs_dtype = jnp.dtype(mxu_dtype)

    k = _choose_pack_factor(T, D, rhs_dtype.itemsize)

    # Pad only to a multiple of k (needed for the free row-major repack). Ragged row tiles are
    # handled by the grid itself, so there is no full-tile pad / slice copy when B % k == 0.
    B_pad = _round_up(B, k)
    dw = doc_weights if B_pad == B else jnp.pad(doc_weights, ((0, B_pad - B), (0, 0)))
    R = B_pad // k
    w_packed = dw.reshape(R, k * T)  # free row-major view

    # ---- packed-row tile size ----
    if block_rows is None:
        stream_row = 2 * (k * T + k * D) * itemsize          # double-buffered in + out streams
        compute_row = (k * T + 4 * k * D) * 4                # f32 e, matmul result, recip/product
        budget = 26 * 1024 * 1024
        rb = min(8192, budget // (stream_row + compute_row))
        if R >= 32:                                          # v7x megacore: keep >= 4 parallel steps
            rb = min(rb, _round_up(pl.cdiv(R, 4), 8))
        rb = min(rb, _round_up(R, 8))
        if rb >= 256:
            rb = (rb // 128) * 128
        rb = max(8, (rb // 8) * 8)
    else:
        rb = max(8, _round_up(block_rows, 8))

    # Fused resident RHS: [ block_diag(topic_vectors) | block_diag(ones(T, D)) ]  (k*T, 2*k*D).
    eye_k = jnp.eye(k, dtype=rhs_dtype)
    tv_block = jnp.kron(eye_k, topic_vectors.astype(rhs_dtype))
    ones_block = jnp.kron(eye_k, jnp.ones((T, D), dtype=rhs_dtype))
    rhs = jnp.concatenate([tv_block, ones_block], axis=-1)

    kernel = functools.partial(_topic_embedding_kernel, kd=k * D)
    out_packed = pl.pallas_call(
        kernel,
        out_shape=jax.ShapeDtypeStruct((R, k * D), out_dtype),
        grid_spec=pltpu.PrefetchScalarGridSpec(
            num_scalar_prefetch=0,
            grid=(pl.cdiv(R, rb),),                          # ragged trailing block is masked
            in_specs=[
                pl.BlockSpec((rb, k * T), lambda i: (i, 0)),          # batch-tiled packed logits
                pl.BlockSpec((k * T, 2 * k * D), lambda i: (0, 0)),   # resident fused RHS
            ],
            out_specs=pl.BlockSpec((rb, k * D), lambda i: (i, 0)),
        ),
        compiler_params=pltpu.CompilerParams(
            dimension_semantics=("parallel",),
            vmem_limit_bytes=40 * 1024 * 1024,
        ),
        cost_estimate=pl.CostEstimate(
            flops=4 * B_pad * T * k * D,
            transcendentals=B_pad * (T + D),
            bytes_accessed=itemsize * B_pad * T
            + jnp.dtype(out_dtype).itemsize * B_pad * D
            + rhs.size * rhs_dtype.itemsize,
        ),
    )(w_packed, rhs)

    out = out_packed.reshape(B_pad, D)
    return out[:B] if B_pad != B else out


def make_topic_vectors(key, n_topics, embedding_dim):
    """Deterministic stand-in for scipy.stats.ortho_group.rvs(embedding_dim)[:n_topics]:
    rows of a random orthogonal matrix (QR of a Gaussian)."""
    assert n_topics < embedding_dim
    g = jax.random.normal(key, (embedding_dim, embedding_dim), dtype=jnp.float32)
    q, r = jnp.linalg.qr(g)
    q = q * jnp.sign(jnp.diag(r))[None, :]
    return q[:n_topics, :]


def _reference(doc_weights, topic_vectors):
    probs = jax.nn.softmax(doc_weights, axis=1)
    return (probs[:, :, None] * topic_vectors[None, :, :]).sum(axis=1)


if __name__ == "__main__":
    key = jax.random.PRNGKey(0)
    k_w, k_tv, k_w2 = jax.random.split(key, 3)

    n_topics, embedding_dim = 8, 32
    topic_vectors = make_topic_vectors(k_tv, n_topics, embedding_dim)

    # Tolerance: approx reciprocal only (f32 MXU) vs bf16 MXU operands (v5e auto path).
    bf16_path = jnp.dtype(_select_mxu_dtype(jnp.float32)) == jnp.dtype(jnp.bfloat16)
    tol = 1e-2 if bf16_path else 2e-3

    # Small shape consistent with the module's forward: batch of 16 documents.
    B = 16
    doc_weights = jax.random.normal(k_w, (B, n_topics), dtype=jnp.float32)
    out = jax.block_until_ready(topic_embedding_forward(doc_weights, topic_vectors))
    ref = _reference(doc_weights, topic_vectors)
    assert out.shape == (B, embedding_dim)
    assert jnp.allclose(out, ref, atol=tol, rtol=tol), float(jnp.max(jnp.abs(out - ref)))

    # Batch that is not a multiple of the pack factor: exercises the tiny k-pad + ragged grid.
    B2 = 1000
    doc_weights2 = jax.random.normal(k_w2, (B2, n_topics), dtype=jnp.float32)
    out2 = jax.block_until_ready(topic_embedding_forward(doc_weights2, topic_vectors))
    ref2 = _reference(doc_weights2, topic_vectors)
    assert out2.shape == (B2, embedding_dim)
    assert jnp.allclose(out2, ref2, atol=tol, rtol=tol), float(jnp.max(jnp.abs(out2 - ref2)))

    print("KERNEL_OK")
</pallas_src>

<mosaic_0001>
module attributes {stable_mosaic.version = 11 : i64} {
  func.func @_topic_embedding_kernel(%arg0: i32, %arg1: memref<8x128xf32, #tpu.memory_space<vmem>>, %arg2: memref<128x1024xf32, #tpu.memory_space<vmem>>, %arg3: memref<8x512xf32, #tpu.memory_space<vmem>>) attributes {dimension_semantics = [#tpu.dimension_semantics<parallel>], iteration_bounds = array<i64: 1>, scalar_prefetch = 0 : i64, scratch_operands = 0 : i64, tpu.core_type = #tpu.core_type<tc>, window_params = [{transform_indices = @transform_0, window_bounds = array<i64: 8, 128>}, {pipeline_mode = #tpu.pipeline_mode<synchronous>, transform_indices = @transform_1, window_bounds = array<i64: 128, 1024>}, {transform_indices = @transform_2, window_bounds = array<i64: 8, 512>}]} {
    %c0 = arith.constant 0 : index
    %c0_0 = arith.constant 0 : index
    %0 = vector.load %arg1[%c0, %c0_0] : memref<8x128xf32, #tpu.memory_space<vmem>>, vector<8x128xf32>
    %cst = arith.constant dense<0xFF800000> : vector<8xf32>
    %1 = vector.multi_reduction <maximumf>, %0, %cst [1] : vector<8x128xf32> to vector<8xf32>
    %2 = vector.shape_cast %1 : vector<8xf32> to vector<8x1xf32>
    %3 = vector.broadcast %2 : vector<8x1xf32> to vector<8x128xf32>
    %4 = arith.subf %0, %3 : vector<8x128xf32>
    %5 = math.exp %4 : vector<8x128xf32>
    %c0_1 = arith.constant 0 : index
    %c0_2 = arith.constant 0 : index
    %6 = vector.load %arg2[%c0_1, %c0_2] : memref<128x1024xf32, #tpu.memory_space<vmem>>, vector<128x1024xf32>
    %cst_3 = arith.constant dense<0.000000e+00> : vector<8x1024xf32>
    %7 = tpu.matmul %5, %6, %cst_3 {dimension_numbers = #tpu.dot_dimension_numbers<[1], [0], [0], [1], [0, 0, 1, 1], [], []>} : vector<8x128xf32>, vector<128x1024xf32>, vector<8x1024xf32> -> vector<8x1024xf32>
    %8 = vector.extract_strided_slice %7 {offsets = [0, 0], sizes = [8, 512], strides = [1, 1]} : vector<8x1024xf32> to vector<8x512xf32>
    %9 = vector.extract_strided_slice %7 {offsets = [0, 512], sizes = [8, 512], strides = [1, 1]} : vector<8x1024xf32> to vector<8x512xf32>
    %cst_4 = arith.constant 1.000000e-30 : f32
    %10 = vector.broadcast %cst_4 : f32 to vector<8x512xf32>
    %11 = arith.maximumf %9, %10 : vector<8x512xf32>
    %12 = tpu.reciprocal %11 {approx = true} : vector<8x512xf32> -> vector<8x512xf32>
    %13 = arith.mulf %8, %12 : vector<8x512xf32>
    %c0_5 = arith.constant 0 : index
    %c0_6 = arith.constant 0 : index
    %14 = vector.load %arg3[%c0_5, %c0_6] : memref<8x512xf32, #tpu.memory_space<vmem>>, vector<8x512xf32>
    tpu.vector_store %arg3[%c0_5, %c0_6], %13 {strides = array<i32>} : memref<8x512xf32, #tpu.memory_space<vmem>>, vector<8x512xf32>,
    return
  }
  func.func @transform_0(%arg0: i32) -> (i32, i32) {
    %c0_i32 = arith.constant 0 : i32
    %c0_i32_0 = arith.constant 0 : i32
    return %arg0, %c0_i32 : i32, i32
  }
  func.func @transform_1(%arg0: i32) -> (i32, i32) {
    %c0_i32 = arith.constant 0 : i32
    %c0_i32_0 = arith.constant 0 : i32
    %c0_i32_1 = arith.constant 0 : i32
    return %c0_i32, %c0_i32_0 : i32, i32
  }
  func.func @transform_2(%arg0: i32) -> (i32, i32) {
    %c0_i32 = arith.constant 0 : i32
    %c0_i32_0 = arith.constant 0 : i32
    return %arg0, %c0_i32 : i32, i32
  }
}

</mosaic_0001>

<bundles_post_ra>
// kernel: tpu_custom_call.1
= control target key start
LH: loop header
LB: loop body
LE: loop exit
PB: predicated region body
PF: predicated region fallthrough
CT: control target
= control target key end

     0   :  { %7 = vsyncpa [#allocation3], 0  ;;  %s623_s0 = inlined_call_operand.hbm [shape: f32[1,128], index: 0, kind: input, shape index: {}]   ;;  %s624_s1 = inlined_call_operand.hbm [shape: f32[128,1024], index: 1, kind: input, shape index: {}]   ;;  %s625_s2 = inlined_call_operand.hbm [shape: f32[1,512], index: 2, kind: output, shape index: {}]  }
   0x1   :  { %8 = vsyncpa [#allocation6], 0 }
   0x2   :  { %9 = vsyncpa [#allocation4], 0 }
   0x3   :  { %13 = vsyncadd [#allocation3], 112  ;;  %s14_s11 = sshll.u32 %s623_s0, 4  ;;  %s540_s12 = smov [#allocation2]   ;;  %s15_s11 = int_to_ptr.hbm [resolvable:$true] %s14_s11 }
   0x4   :  { %s16_s13 = sshll.u32 %s540_s12, 4  ;;  %s27_s16 = sshll.u32 %s624_s1, 4  ;;  %s17_s13 = int_to_ptr.vmem [resolvable:$true] %s16_s13  ;;  %s28_s16 = int_to_ptr.hbm [resolvable:$true] %s27_s16 }
   0x5   :  { %s541_s17 = smov 16   ;;  %s542_s18 = smov 1  }
   0x6   :  { %22 = dma.hbm_to_vmem [thread:$0]  %s15_s11, 16, %s17_s13, [#allocation3], %s541_s17, %s541_s17, %s542_s18  }
   0x7   :  { %s543_s19 = smov [#allocation5]   ;;  %s544_s21 = smov 1024  }
   0x8   :  { %s29_s20 = sshll.u32 %s543_s19, 4  ;;  %s545_s22 = smov 64   ;;  %s30_s20 = int_to_ptr.vmem [resolvable:$true] %s29_s20 }
   0x9   :  { %35 = dma.hbm_to_vmem [thread:$0]  %s28_s16, 16384, %s30_s20, [#allocation6], %s544_s21, %s544_s21, %s545_s22  }
   0xa   :  { %534 = dma.done.wait [#allocation3], 128  }
   0xb   :  { %535 = vsyncadd [#allocation3], 4294967168 }
   0xc   :  { %536 = dma.done.wait [#allocation6], 16384  }
   0xd   :  { %537 = vsyncadd [#allocation6], 4294950912  ;;  %v570_v0 = vld [vmem:[#allocation2] sm:$0xff]  ;;  %v170_v1 = vld [vmem:[#allocation5 + $0x3c0] sm:$0xff]  ;;  %vm357_vm0 = vcmask 1040384   ;;  %vm359_vm1 = vcmask 1042434  }
   0xe   :  { %v171_v2 = vld [vmem:[#allocation5 + $0x3c8] sm:$0xff]  ;;  %45 = vmax.xlane.f32.xlu0 %v570_v0  ;;  %178 = vmatpush.msra.mxu0 %v170_v1  ;;  %v172_v3 = vld [vmem:[#allocation5 + $0x3d0] sm:$0xff]  ;;  %v173_v4 = vld [vmem:[#allocation5 + $0x3d8] sm:$0xff]  ;;  %vm363_vm2 = vcmask 1041409   ;;  %vm365_vm3 = vcmask 1043459   ;;  %vm371_vm4 = vcmask 1044484  }
   0xf   :  { %v162_v5 = vld [vmem:[#allocation5 + $0x380] sm:$0xff]  ;;  %198 = vmatpush.msra.mxu1 %v171_v2  ;;  %218 = vmatpush.msra.mxu2 %v172_v3  ;;  %v163_v6 = vld [vmem:[#allocation5 + $0x388] sm:$0xff]  ;;  %v164_v7 = vld [vmem:[#allocation5 + $0x390] sm:$0xff]  ;;  %vm383_vm6 = vcmask 1046534   ;;  %vm389_vm7 = vcmask 1046528   ;;  %vm361_vm8 = vcmask 1041408  }
  0x10   :  { %v165_v8 = vld [vmem:[#allocation5 + $0x398] sm:$0xff]  ;;  %238 = vmatpush.msra.mxu3 %v173_v4  ;;  %179 = vmatpush.msra.mxu0 %v162_v5  ;;  %v154_v9 = vld [vmem:[#allocation5 + $0x340] sm:$0xff]  ;;  %v155_v10 = vld [vmem:[#allocation5 + $0x348] sm:$0xff]  ;;  %vm367_vm9 = vcmask 1042433   ;;  %vm373_vm10 = vcmask 1043458   ;;  %vm379_vm11 = vcmask 1044483  }
  0x11   :  { %v156_v11 = vld [vmem:[#allocation5 + $0x350] sm:$0xff]  ;;  %199 = vmatpush.msra.mxu1 %v163_v6  ;;  %219 = vmatpush.msra.mxu2 %v164_v7  ;;  %v157_v12 = vld [vmem:[#allocation5 + $0x358] sm:$0xff]  ;;  %v146_v13 = vld [vmem:[#allocation5 + $0x300] sm:$0xff]  ;;  %vm391_vm13 = vcmask 1046533   ;;  %vm396_vm14 = vcmask 1045504   ;;  %vm628_vm12 = vcmask 1045509  }
  0x12   :  { %239 = vmatpush.msra.mxu3 %v165_v8  ;;  %180 = vmatpush.msra.mxu0 %v154_v9  ;;  %v147_v14 = vld [vmem:[#allocation5 + $0x308] sm:$0xff]  ;;  %v148_v15 = vld [vmem:[#allocation5 + $0x310] sm:$0xff]  ;;  %v149_v16 = vld [vmem:[#allocation5 + $0x318] sm:$0xff] }
  0x13   :  { %200 = vmatpush.msra.mxu1 %v155_v10  ;;  %220 = vmatpush.msra.mxu2 %v156_v11  ;;  %v138_v17 = vld [vmem:[#allocation5 + $0x2c0] sm:$0xff]  ;;  %v139_v18 = vld [vmem:[#allocation5 + $0x2c8] sm:$0xff]  ;;  %v140_v19 = vld [vmem:[#allocation5 + $0x2d0] sm:$0xff] }
  0x14   :  { %240 = vmatpush.msra.mxu3 %v157_v12  ;;  %181 = vmatpush.msra.mxu0 %v146_v13  ;;  %v141_v20 = vld [vmem:[#allocation5 + $0x2d8] sm:$0xff]  ;;  %v130_v21 = vld [vmem:[#allocation5 + $0x280] sm:$0xff]  ;;  %v131_v22 = vld [vmem:[#allocation5 + $0x288] sm:$0xff] }
  0x15   :  { %201 = vmatpush.msra.mxu1 %v147_v14  ;;  %221 = vmatpush.msra.mxu2 %v148_v15  ;;  %v132_v23 = vld [vmem:[#allocation5 + $0x290] sm:$0xff]  ;;  %v133_v24 = vld [vmem:[#allocation5 + $0x298] sm:$0xff]  ;;  %v122_v25 = vld [vmem:[#allocation5 + $0x240] sm:$0xff] }
  0x16   :  { %241 = vmatpush.msra.mxu3 %v149_v16  ;;  %182 = vmatpush.msra.mxu0 %v138_v17  ;;  %v123_v26 = vld [vmem:[#allocation5 + $0x248] sm:$0xff]  ;;  %v124_v27 = vld [vmem:[#allocation5 + $0x250] sm:$0xff]  ;;  %v125_v28 = vld [vmem:[#allocation5 + $0x258] sm:$0xff] }
  0x17   :  { %202 = vmatpush.msra.mxu1 %v139_v18  ;;  %222 = vmatpush.msra.mxu2 %v140_v19  ;;  %v114_v29 = vld [vmem:[#allocation5 + $0x200] sm:$0xff]  ;;  %v115_v30 = vld [vmem:[#allocation5 + $0x208] sm:$0xff]  ;;  %v116_v31 = vld [vmem:[#allocation5 + $0x210] sm:$0xff] }
  0x18   :  { %242 = vmatpush.msra.mxu3 %v141_v20  ;;  %183 = vmatpush.msra.mxu0 %v130_v21  ;;  %v117_v32 = vld [vmem:[#allocation5 + $0x218] sm:$0xff]  ;;  %v106_v33 = vld [vmem:[#allocation5 + $0x1c0] sm:$0xff]  ;;  %v107_v34 = vld [vmem:[#allocation5 + $0x1c8] sm:$0xff] }
  0x19   :  { %203 = vmatpush.msra.mxu1 %v131_v22  ;;  %223 = vmatpush.msra.mxu2 %v132_v23  ;;  %v108_v35 = vld [vmem:[#allocation5 + $0x1d0] sm:$0xff]  ;;  %v109_v36 = vld [vmem:[#allocation5 + $0x1d8] sm:$0xff]  ;;  %v98_v37 = vld [vmem:[#allocation5 + $0x180] sm:$0xff] }
  0x1a   :  { %243 = vmatpush.msra.mxu3 %v133_v24  ;;  %184 = vmatpush.msra.mxu0 %v122_v25  ;;  %v99_v38 = vld [vmem:[#allocation5 + $0x188] sm:$0xff]  ;;  %v100_v39 = vld [vmem:[#allocation5 + $0x190] sm:$0xff]  ;;  %v101_v40 = vld [vmem:[#allocation5 + $0x198] sm:$0xff] }
  0x1b   :  { %204 = vmatpush.msra.mxu1 %v123_v26  ;;  %224 = vmatpush.msra.mxu2 %v124_v27  ;;  %v90_v41 = vld [vmem:[#allocation5 + $0x140] sm:$0xff]  ;;  %v91_v42 = vld [vmem:[#allocation5 + $0x148] sm:$0xff]  ;;  %v92_v43 = vld [vmem:[#allocation5 + $0x150] sm:$0xff] }
  0x1c   :  { %244 = vmatpush.msra.mxu3 %v125_v28  ;;  %185 = vmatpush.msra.mxu0 %v114_v29  ;;  %v93_v44 = vld [vmem:[#allocation5 + $0x158] sm:$0xff]  ;;  %v82_v45 = vld [vmem:[#allocation5 + $0x100] sm:$0xff]  ;;  %v83_v46 = vld [vmem:[#allocation5 + $0x108] sm:$0xff] }
  0x1d   :  { %205 = vmatpush.msra.mxu1 %v115_v30  ;;  %225 = vmatpush.msra.mxu2 %v116_v31  ;;  %v84_v47 = vld [vmem:[#allocation5 + $0x110] sm:$0xff]  ;;  %v85_v48 = vld [vmem:[#allocation5 + $0x118] sm:$0xff]  ;;  %v74_v49 = vld [vmem:[#allocation5 + $0xc0] sm:$0xff] }
  0x1e   :  { %245 = vmatpush.msra.mxu3 %v117_v32  ;;  %186 = vmatpush.msra.mxu0 %v106_v33  ;;  %v75_v50 = vld [vmem:[#allocation5 + $0xc8] sm:$0xff]  ;;  %v76_v51 = vld [vmem:[#allocation5 + $0xd0] sm:$0xff]  ;;  %v77_v52 = vld [vmem:[#allocation5 + $0xd8] sm:$0xff] }
  0x1f   :  { %206 = vmatpush.msra.mxu1 %v107_v34  ;;  %226 = vmatpush.msra.mxu2 %v108_v35  ;;  %v66_v53 = vld [vmem:[#allocation5 + $0x80] sm:$0xff]  ;;  %v67_v54 = vld [vmem:[#allocation5 + $0x88] sm:$0xff]  ;;  %v68_v55 = vld [vmem:[#allocation5 + $0x90] sm:$0xff] }
  0x20   :  { %246 = vmatpush.msra.mxu3 %v109_v36  ;;  %187 = vmatpush.msra.mxu0 %v98_v37  ;;  %v69_v56 = vld [vmem:[#allocation5 + $0x98] sm:$0xff]  ;;  %v58_v57 = vld [vmem:[#allocation5 + $0x40] sm:$0xff]  ;;  %v59_v58 = vld [vmem:[#allocation5 + $0x48] sm:$0xff] }
  0x21   :  { %207 = vmatpush.msra.mxu1 %v99_v38  ;;  %227 = vmatpush.msra.mxu2 %v100_v39  ;;  %v60_v59 = vld [vmem:[#allocation5 + $0x50] sm:$0xff]  ;;  %v61_v60 = vld [vmem:[#allocation5 + $0x58] sm:$0xff]  ;;  %v50_v61 = vld [vmem:[#allocation5] sm:$0xff] }
  0x22   :  { %247 = vmatpush.msra.mxu3 %v101_v40  ;;  %188 = vmatpush.msra.mxu0 %v90_v41  ;;  %v51_v62 = vld [vmem:[#allocation5 + $0x8] sm:$0xff]  ;;  %v52_v63 = vld [vmem:[#allocation5 + $0x10] sm:$0xff]  ;;  %v53_v1 = vld [vmem:[#allocation5 + $0x18] sm:$0xff] }
  0x23   :  { %208 = vmatpush.msra.mxu1 %v91_v42  ;;  %228 = vmatpush.msra.mxu2 %v92_v43  ;;  %v174_v2 = vld [vmem:[#allocation5 + $0x3e0] sm:$0xff]  ;;  %v175_v3 = vld [vmem:[#allocation5 + $0x3e8] sm:$0xff]  ;;  %v176_v4 = vld [vmem:[#allocation5 + $0x3f0] sm:$0xff] }
  0x24   :  { %248 = vmatpush.msra.mxu3 %v93_v44  ;;  %189 = vmatpush.msra.mxu0 %v82_v45  ;;  %v177_v5 = vld [vmem:[#allocation5 + $0x3f8] sm:$0xff]  ;;  %v166_v6 = vld [vmem:[#allocation5 + $0x3a0] sm:$0xff]  ;;  %v167_v7 = vld [vmem:[#allocation5 + $0x3a8] sm:$0xff] }
  0x25   :  { %209 = vmatpush.msra.mxu1 %v83_v46  ;;  %229 = vmatpush.msra.mxu2 %v84_v47  ;;  %v168_v8 = vld [vmem:[#allocation5 + $0x3b0] sm:$0xff]  ;;  %v169_v9 = vld [vmem:[#allocation5 + $0x3b8] sm:$0xff]  ;;  %v158_v10 = vld [vmem:[#allocation5 + $0x360] sm:$0xff] }
  0x26   :  { %249 = vmatpush.msra.mxu3 %v85_v48  ;;  %190 = vmatpush.msra.mxu0 %v74_v49  ;;  %v159_v11 = vld [vmem:[#allocation5 + $0x368] sm:$0xff]  ;;  %v160_v12 = vld [vmem:[#allocation5 + $0x370] sm:$0xff]  ;;  %v161_v13 = vld [vmem:[#allocation5 + $0x378] sm:$0xff] }
  0x27   :  { %210 = vmatpush.msra.mxu1 %v75_v50  ;;  %230 = vmatpush.msra.mxu2 %v76_v51  ;;  %v150_v14 = vld [vmem:[#allocation5 + $0x320] sm:$0xff]  ;;  %v151_v15 = vld [vmem:[#allocation5 + $0x328] sm:$0xff]  ;;  %v152_v16 = vld [vmem:[#allocation5 + $0x330] sm:$0xff] }
  0x28   :  { %250 = vmatpush.msra.mxu3 %v77_v52  ;;  %191 = vmatpush.msra.mxu0 %v66_v53  ;;  %v153_v17 = vld [vmem:[#allocation5 + $0x338] sm:$0xff]  ;;  %v142_v18 = vld [vmem:[#allocation5 + $0x2e0] sm:$0xff]  ;;  %v143_v19 = vld [vmem:[#allocation5 + $0x2e8] sm:$0xff] }
  0x29   :  { %211 = vmatpush.msra.mxu1 %v67_v54  ;;  %231 = vmatpush.msra.mxu2 %v68_v55  ;;  %v144_v20 = vld [vmem:[#allocation5 + $0x2f0] sm:$0xff]  ;;  %v145_v21 = vld [vmem:[#allocation5 + $0x2f8] sm:$0xff]  ;;  %v134_v22 = vld [vmem:[#allocation5 + $0x2a0] sm:$0xff] }
  0x2a   :  { %251 = vmatpush.msra.mxu3 %v69_v56  ;;  %192 = vmatpush.msra.mxu0 %v58_v57  ;;  %v135_v23 = vld [vmem:[#allocation5 + $0x2a8] sm:$0xff]  ;;  %v136_v24 = vld [vmem:[#allocation5 + $0x2b0] sm:$0xff]  ;;  %v137_v25 = vld [vmem:[#allocation5 + $0x2b8] sm:$0xff] }
  0x2b   :  { %212 = vmatpush.msra.mxu1 %v59_v58  ;;  %232 = vmatpush.msra.mxu2 %v60_v59  ;;  %v126_v26 = vld [vmem:[#allocation5 + $0x260] sm:$0xff]  ;;  %v127_v27 = vld [vmem:[#allocation5 + $0x268] sm:$0xff]  ;;  %v128_v28 = vld [vmem:[#allocation5 + $0x270] sm:$0xff] }
  0x2c   :  { %252 = vmatpush.msra.mxu3 %v61_v60  ;;  %193 = vmatpush.msra.mxu0 %v50_v61  ;;  %v129_v29 = vld [vmem:[#allocation5 + $0x278] sm:$0xff]  ;;  %v118_v30 = vld [vmem:[#allocation5 + $0x220] sm:$0xff]  ;;  %v119_v31 = vld [vmem:[#allocation5 + $0x228] sm:$0xff] }
  0x2d   :  { %213 = vmatpush.msra.mxu1 %v51_v62  ;;  %233 = vmatpush.msra.mxu2 %v52_v63  ;;  %v120_v32 = vld [vmem:[#allocation5 + $0x230] sm:$0xff]  ;;  %v121_v33 = vld [vmem:[#allocation5 + $0x238] sm:$0xff]  ;;  %v110_v34 = vld [vmem:[#allocation5 + $0x1e0] sm:$0xff] }
  0x2e   :  { %253 = vmatpush.msra.mxu3 %v53_v1  ;;  %258 = vmatpush.msrb.mxu0 %v174_v2  ;;  %v111_v35 = vld [vmem:[#allocation5 + $0x1e8] sm:$0xff]  ;;  %v112_v36 = vld [vmem:[#allocation5 + $0x1f0] sm:$0xff]  ;;  %v113_v37 = vld [vmem:[#allocation5 + $0x1f8] sm:$0xff] }
  0x2f   :  { %278 = vmatpush.msrb.mxu1 %v175_v3  ;;  %298 = vmatpush.msrb.mxu2 %v176_v4  ;;  %v102_v38 = vld [vmem:[#allocation5 + $0x1a0] sm:$0xff]  ;;  %v103_v39 = vld [vmem:[#allocation5 + $0x1a8] sm:$0xff]  ;;  %v104_v40 = vld [vmem:[#allocation5 + $0x1b0] sm:$0xff] }
  0x30   :  { %318 = vmatpush.msrb.mxu3 %v177_v5  ;;  %259 = vmatpush.msrb.mxu0 %v166_v6  ;;  %v105_v41 = vld [vmem:[#allocation5 + $0x1b8] sm:$0xff]  ;;  %v94_v42 = vld [vmem:[#allocation5 + $0x160] sm:$0xff]  ;;  %v95_v43 = vld [vmem:[#allocation5 + $0x168] sm:$0xff] }
  0x31   :  { %279 = vmatpush.msrb.mxu1 %v167_v7  ;;  %299 = vmatpush.msrb.mxu2 %v168_v8  ;;  %v96_v44 = vld [vmem:[#allocation5 + $0x170] sm:$0xff]  ;;  %v97_v45 = vld [vmem:[#allocation5 + $0x178] sm:$0xff]  ;;  %v86_v46 = vld [vmem:[#allocation5 + $0x120] sm:$0xff] }
  0x32   :  { %319 = vmatpush.msrb.mxu3 %v169_v9  ;;  %260 = vmatpush.msrb.mxu0 %v158_v10  ;;  %v87_v47 = vld [vmem:[#allocation5 + $0x128] sm:$0xff]  ;;  %v88_v48 = vld [vmem:[#allocation5 + $0x130] sm:$0xff]  ;;  %v89_v49 = vld [vmem:[#allocation5 + $0x138] sm:$0xff] }
  0x33   :  { %280 = vmatpush.msrb.mxu1 %v159_v11  ;;  %300 = vmatpush.msrb.mxu2 %v160_v12  ;;  %v78_v50 = vld [vmem:[#allocation5 + $0xe0] sm:$0xff]  ;;  %v79_v51 = vld [vmem:[#allocation5 + $0xe8] sm:$0xff]  ;;  %v80_v52 = vld [vmem:[#allocation5 + $0xf0] sm:$0xff] }
  0x34   :  { %320 = vmatpush.msrb.mxu3 %v161_v13  ;;  %261 = vmatpush.msrb.mxu0 %v150_v14  ;;  %v81_v53 = vld [vmem:[#allocation5 + $0xf8] sm:$0xff]  ;;  %v70_v54 = vld [vmem:[#allocation5 + $0xa0] sm:$0xff]  ;;  %v71_v55 = vld [vmem:[#allocation5 + $0xa8] sm:$0xff] }
  0x35   :  { %281 = vmatpush.msrb.mxu1 %v151_v15  ;;  %301 = vmatpush.msrb.mxu2 %v152_v16  ;;  %v72_v56 = vld [vmem:[#allocation5 + $0xb0] sm:$0xff]  ;;  %v73_v57 = vld [vmem:[#allocation5 + $0xb8] sm:$0xff]  ;;  %v62_v58 = vld [vmem:[#allocation5 + $0x60] sm:$0xff] }
  0x36   :  { %321 = vmatpush.msrb.mxu3 %v153_v17  ;;  %262 = vmatpush.msrb.mxu0 %v142_v18  ;;  %v63_v59 = vld [vmem:[#allocation5 + $0x68] sm:$0xff]  ;;  %v64_v60 = vld [vmem:[#allocation5 + $0x70] sm:$0xff]  ;;  %v65_v61 = vld [vmem:[#allocation5 + $0x78] sm:$0xff] }
  0x37   :  { %282 = vmatpush.msrb.mxu1 %v143_v19  ;;  %302 = vmatpush.msrb.mxu2 %v144_v20  ;;  %v54_v62 = vld [vmem:[#allocation5 + $0x20] sm:$0xff]  ;;  %v55_v63 = vld [vmem:[#allocation5 + $0x28] sm:$0xff]  ;;  %v56_v1 = vld [vmem:[#allocation5 + $0x30] sm:$0xff] }
  0x38   :  { %322 = vmatpush.msrb.mxu3 %v145_v21  ;;  %263 = vmatpush.msrb.mxu0 %v134_v22  ;;  %v57_v2 = vld [vmem:[#allocation5 + $0x38] sm:$0xff]  ;;  %v412_v22 = vlaneseq  ;;  %vm629_vm15 = vmmov %vm628_vm12 }
  0x39   :  { %283 = vmatpush.msrb.mxu1 %v135_v23  ;;  %303 = vmatpush.msrb.mxu2 %v136_v24 }
  0x3a   :  { %323 = vmatpush.msrb.mxu3 %v137_v25  ;;  %264 = vmatpush.msrb.mxu0 %v126_v26  ;;  %vm575_vm5 = vcmp.lt.s32.totalorder %v412_v22, 512 }
  0x3b   :  { %284 = vmatpush.msrb.mxu1 %v127_v27  ;;  %304 = vmatpush.msrb.mxu2 %v128_v28 }
  0x3c   :  { %324 = vmatpush.msrb.mxu3 %v129_v29  ;;  %265 = vmatpush.msrb.mxu0 %v118_v30 }
  0x3d   :  { %285 = vmatpush.msrb.mxu1 %v119_v31  ;;  %305 = vmatpush.msrb.mxu2 %v120_v32 }
  0x3e   :  { %325 = vmatpush.msrb.mxu3 %v121_v33  ;;  %266 = vmatpush.msrb.mxu0 %v110_v34 }
  0x3f   :  { %286 = vmatpush.msrb.mxu1 %v111_v35  ;;  %306 = vmatpush.msrb.mxu2 %v112_v36 }
  0x40   :  { %326 = vmatpush.msrb.mxu3 %v113_v37  ;;  %267 = vmatpush.msrb.mxu0 %v102_v38 }
  0x41   :  { %287 = vmatpush.msrb.mxu1 %v103_v39  ;;  %307 = vmatpush.msrb.mxu2 %v104_v40 }
  0x42   :  { %327 = vmatpush.msrb.mxu3 %v105_v41  ;;  %268 = vmatpush.msrb.mxu0 %v94_v42 }
  0x43   :  { %288 = vmatpush.msrb.mxu1 %v95_v43  ;;  %308 = vmatpush.msrb.mxu2 %v96_v44 }
  0x44   :  { %328 = vmatpush.msrb.mxu3 %v97_v45  ;;  %269 = vmatpush.msrb.mxu0 %v86_v46 }
  0x45   :  { %289 = vmatpush.msrb.mxu1 %v87_v47  ;;  %309 = vmatpush.msrb.mxu2 %v88_v48 }
  0x46   :  { %329 = vmatpush.msrb.mxu3 %v89_v49  ;;  %270 = vmatpush.msrb.mxu0 %v78_v50 }
  0x47   :  { %290 = vmatpush.msrb.mxu1 %v79_v51  ;;  %310 = vmatpush.msrb.mxu2 %v80_v52 }
  0x48   :  { %330 = vmatpush.msrb.mxu3 %v81_v53  ;;  %271 = vmatpush.msrb.mxu0 %v70_v54 }
  0x49   :  { %291 = vmatpush.msrb.mxu1 %v71_v55  ;;  %311 = vmatpush.msrb.mxu2 %v72_v56 }
  0x4a   :  { %331 = vmatpush.msrb.mxu3 %v73_v57  ;;  %272 = vmatpush.msrb.mxu0 %v62_v58 }
  0x4b   :  { %292 = vmatpush.msrb.mxu1 %v63_v59  ;;  %312 = vmatpush.msrb.mxu2 %v64_v60 }
  0x4c   :  { %332 = vmatpush.msrb.mxu3 %v65_v61  ;;  %273 = vmatpush.msrb.mxu0 %v54_v62 }
  0x4d   :  { %293 = vmatpush.msrb.mxu1 %v55_v63  ;;  %313 = vmatpush.msrb.mxu2 %v56_v1 }
  0x4e   :  { %333 = vmatpush.msrb.mxu3 %v57_v2 }
  0x81   :  { %v46_v3 = vpop.xlane.xlu0 %45 }
  0x82   :  { %v47_v4 = vsub.f32 %v570_v0, %v46_v3 }
  0x84   :  { %v48_v5 = vmul.f32 1.442695, %v47_v4 }
  0x86   :  { %452 = vpow2.f32 %v48_v5 }
  0x8c   :  { %v453_v6 = vpop.eup %452 }
  0x8d   :  { %194 = vmatmul.f32.vlgmr.msra.gmra.mxu0 %v453_v6  ;;  %214 = vmatmul.f32.vlgmr.msra.gmra.mxu1 %v453_v6 }
  0x8e   :  { %234 = vmatmul.f32.vlgmr.msra.gmra.mxu2 %v453_v6  ;;  %254 = vmatmul.f32.vlgmr.msra.gmra.mxu3 %v453_v6 }
  0x95   :  { %274 = vmatmul.f32.vlgmr.msrb.gmra.mxu0 %v453_v6  ;;  %294 = vmatmul.f32.vlgmr.msrb.gmra.mxu1 %v453_v6 }
  0x96   :  { %314 = vmatmul.f32.vlgmr.msrb.gmra.mxu2 %v453_v6  ;;  %334 = vmatmul.f32.vlgmr.msrb.gmra.mxu3 %v453_v6 }
 0x10a   :  { %v195_v7 = vpop.f32.mrf.mxu0  ;;  %v215_v8 = vpop.f32.mrf.mxu1 }
 0x111   :  { %v235_v9 = vpop.f32.mrf.mxu2  ;;  %v255_v10 = vpop.f32.mrf.mxu3 }
 0x112   :  { %v295_v11 = vpop.f32.mrf.mxu1  ;;  %v275_v12 = vpop.f32.mrf.mxu0 }
 0x113   :  { %v339_v13 = vmax.f32 %v295_v11, 1e-30  ;;  %v338_v14 = vmax.f32 %v275_v12, 1e-30 }
 0x115   :  { %454 = vrcp.f32 %v339_v13 }
 0x116   :  { %456 = vrcp.f32 %v338_v14 }
 0x119   :  { %v315_v0 = vpop.f32.mrf.mxu2  ;;  %v335_v15 = vpop.f32.mrf.mxu3 }
 0x11a   :  { %v340_v16 = vmax.f32 %v315_v0, 1e-30  ;;  %v341_v17 = vmax.f32 %v335_v15, 1e-30 }
 0x11b   :  { %v455_v18 = vpop.eup %454 }
 0x11c   :  { %458 = vrcp.f32 %v340_v16  ;;  %v347_v19 = vmul.f32 %v455_v18, %v215_v8  ;;  %v457_v20 = vpop.eup %456 }
 0x11d   :  { %460 = vrcp.f32 %v341_v17  ;;  %v346_v25 = vmul.f32 %v457_v20, %v195_v7 }
 0x11e   :  { %v354_v21 = vrot.slane %v347_v19, 7 }
 0x120   :  { %v358_v28 = vsel %vm357_vm0, %v346_v25, %v354_v21  ;;  %v364_v31 = vsel %vm363_vm2, %v346_v25, %v354_v21  ;;  %v370_v32 = vsel %vm359_vm1, %v346_v25, %v354_v21  ;;  %v376_v33 = vsel %vm365_vm3, %v346_v25, %v354_v21 }
 0x121   :  { %v382_v35 = vsel %vm371_vm4, %v346_v25, %v354_v21  ;;  %v388_v36 = vsel %vm628_vm12, %v346_v25, %v354_v21  ;;  %v394_v37 = vsel %vm383_vm6, %v346_v25, %v354_v21  ;;  %v399_v38 = vsel %vm389_vm7, %v354_v21, %v346_v25 }
 0x122   :  { %v459_v23 = vpop.eup %458 }
 0x123   :  { %v461_v24 = vpop.eup %460  ;;  %v348_v26 = vmul.f32 %v459_v23, %v235_v9 }
 0x124   :  { %v349_v27 = vmul.f32 %v461_v24, %v255_v10 }
 0x125   :  { %v355_v29 = vrot.slane %v348_v26, 6 }
 0x126   :  { %v356_v34 = vrot.slane %v349_v27, 5 }
 0x128   :  { %v360_v39 = vsel %vm359_vm1, %v355_v29, %v356_v34  ;;  %v366_v40 = vsel %vm365_vm3, %v355_v29, %v356_v34  ;;  %v372_v41 = vsel %vm371_vm4, %v355_v29, %v356_v34  ;;  %v378_v42 = vsel %vm629_vm15, %v355_v29, %v356_v34 }
 0x129   :  { %v362_v43 = vsel %vm361_vm8, %v358_v28, %v360_v39  ;;  %v368_v44 = vsel %vm367_vm9, %v364_v31, %v366_v40  ;;  %v374_v45 = vsel %vm373_vm10, %v370_v32, %v372_v41  ;;  %v380_v46 = vsel %vm379_vm11, %v376_v33, %v378_v42 }
 0x12a   :  { %v369_v47 = vrot.slane %v368_v44, 1  ;;  %v375_v48 = vrot.slane %v374_v45, 2  ;;  %v381_v49 = vrot.slane %v380_v46, 3  ;;  %v384_v50 = vsel %vm383_vm6, %v355_v29, %v356_v34  ;;  %416 = vst.msk [vmem:[#allocation7] sm:$0xf] %vm575_vm5, %v362_v43 }
 0x12b   :  { %vm630_vm1 = vcmask 1045508   ;;  %v390_v52 = vsel %vm389_vm7, %v356_v34, %v355_v29  ;;  %v395_v53 = vsel %vm357_vm0, %v355_v29, %v356_v34  ;;  %v400_v54 = vsel %vm363_vm2, %v355_v29, %v356_v34 }
 0x12c   :  { %v386_v51 = vsel %vm630_vm1, %v382_v35, %v384_v50  ;;  %v392_v56 = vsel %vm391_vm13, %v388_v36, %v390_v52  ;;  %v397_v57 = vsel %vm396_vm14, %v395_v53, %v394_v37  ;;  %vm631_vm3 = vcmask 1046529   ;;  %417 = vst.msk [vmem:[#allocation7 + $0x4] sm:$0xf] %vm575_vm5, %v369_v47 }
 0x12d   :  { %v387_v55 = vrot.slane %v386_v51, 4  ;;  %v402_v58 = vsel %vm631_vm3, %v400_v54, %v399_v38  ;;  %v393_v59 = vrot.slane %v392_v56, 5  ;;  %v398_v60 = vrot.slane %v397_v57, 6  ;;  %418 = vst.msk [vmem:[#allocation7 + $0x8] sm:$0xf] %vm575_vm5, %v375_v48 }
 0x12e   :  { %v403_v61 = vrot.slane %v402_v58, 7  ;;  %419 = vst.msk [vmem:[#allocation7 + $0xc] sm:$0xf] %vm575_vm5, %v381_v49 }
 0x12f   :  { %420 = vst.msk [vmem:[#allocation7 + $0x10] sm:$0xf] %vm575_vm5, %v387_v55 }
 0x130   :  { %421 = vst.msk [vmem:[#allocation7 + $0x14] sm:$0xf] %vm575_vm5, %v393_v59 }
 0x131   :  { %422 = vst.msk [vmem:[#allocation7 + $0x18] sm:$0xf] %vm575_vm5, %v398_v60 }
 0x132   :  { %423 = vst.msk [vmem:[#allocation7 + $0x1c] sm:$0xf] %vm575_vm5, %v403_v61 }
 0x133   :  { %427 = vsyncadd [#allocation4], 448  ;;  %s430_s23 = sshll.u32 %s625_s2, 4  ;;  %s546_s24 = smov [#allocation7]   ;;  %s431_s23 = int_to_ptr.hbm [resolvable:$true] %s430_s23 }
 0x134   :  { %s428_s25 = sshll.u32 %s546_s24, 4  ;;  %s547_s26 = smov 4   ;;  %s429_s25 = int_to_ptr.vmem [resolvable:$true] %s428_s25 }
 0x135   :  { %436 = dma.vmem_to_hbm [thread:$0]  %s429_s25, 64, %s431_s23, [#allocation4], %s545_s22, %s545_s22, %s547_s26  }
 0x136   :  { %538 = dma.done.wait [#allocation4], 512  }
 0x137   :  { %539 = vsyncadd [#allocation4], 4294966784 }
 0x138   :  { %441 = vsyncpa [#allocation3], 1 }
 0x139   :  { %442 = vsyncpa [#allocation6], 1 }
 0x13a   :  { %443 = vsyncpa [#allocation4], 1 }

</bundles_post_ra>
